<compile_context>
chip_gen: v7x
topology: tpu7x:2x2x1
jax: 0.10.0
libtpu: 0.0.40
codegen_flags: <defaults>
</compile_context>

<pallas_src>
import functools

import jax
import jax.numpy as jnp
from jax.experimental import pallas as pl
from jax.experimental.pallas import tpu as pltpu

_INV_SQRT2 = 0.7071067811865476


def _erf(x):
    # Abramowitz & Stegun 7.1.26 rational approximation, |abs err| < 1.5e-7
    # (i.e. float32-level agreement with the exact erf used by torch GELU).
    a1 = 0.254829592
    a2 = -0.284496736
    a3 = 1.421413741
    a4 = -1.453152027
    a5 = 1.061405429
    p = 0.3275911
    z = jnp.maximum(x, -x)  # |x|
    t = 1.0 / (1.0 + p * z)
    poly = ((((a5 * t + a4) * t + a3) * t + a2) * t + a1) * t
    y = 1.0 - poly * jnp.exp(-z * z)
    return jnp.where(x < 0.0, -y, y)


def _model_kernel(x_ref, wt_ref, b_ref, u_ref, o_ref):
    # x_ref: (rows, 2)   wt_ref: (2, 2) = W^T   b_ref: (1, 2)   u_ref: (4, rows, 2)
    xa = x_ref[...]
    wt = wt_ref[...]
    b = b_ref[...]
    u = u_ref[...]

    # dense1 on the VPU (no MXU / no padded weight):
    #   x2[:, j] = x[:, 0] * Wt[0, j] + x[:, 1] * Wt[1, j] + b[j]
    x2 = xa[:, 0:1] * wt[0:1, :] + xa[:, 1:2] * wt[1:2, :] + b

    # rand_like
    x3 = u[0]

    # Three fused training-mode dropouts of the same activation:
    # combined scale s = sum_i keep_i / (1 - p_i), then x7 = x2 * s + x3.
    s = (jnp.where(u[1] >= 0.1, 1.0 / 0.9, 0.0)
         + jnp.where(u[2] >= 0.2, 1.0 / 0.8, 0.0)
         + jnp.where(u[3] >= 0.3, 1.0 / 0.7, 0.0))
    x7 = x2 * s + x3

    # Exact (erf) GELU, matching torch.nn.GELU() default.
    o_ref[...] = 0.5 * x7 * (1.0 + _erf(x7 * _INV_SQRT2))


@jax.jit
def model_forward(x1, weight, bias, key):
    """x1: (B, L, 2) float32; weight: (2, 2); bias: (2,); key: jax PRNG key."""
    B, L, F = x1.shape
    rows = B * L

    xm = x1.reshape(rows, F).astype(jnp.float32)
    wt = weight.T.astype(jnp.float32)            # (in_features, out_features)
    b = bias.reshape(1, F).astype(jnp.float32)

    # One fused uniform draw: [0]=rand_like, [1..3]=dropout uniforms.
    # TODO(synk): distributional semantics only; torch's RNG stream for
    # rand_like / dropout masks cannot be reproduced bit-exactly.
    u = jax.random.uniform(key, (4, rows, F), jnp.float32)

    out = pl.pallas_call(
        _model_kernel,
        out_shape=jax.ShapeDtypeStruct((rows, F), jnp.float32),
        in_specs=[
            pl.BlockSpec(memory_space=pltpu.MemorySpace.VMEM),   # x
            pl.BlockSpec(memory_space=pltpu.MemorySpace.VMEM),   # W^T
            pl.BlockSpec(memory_space=pltpu.MemorySpace.VMEM),   # bias
            pl.BlockSpec(memory_space=pltpu.MemorySpace.VMEM),   # uniforms
        ],
        out_specs=pl.BlockSpec(memory_space=pltpu.MemorySpace.VMEM),
    )(xm, wt, b, u)

    return out.reshape(B, L, F)


def init_params(key, in_features=2, out_features=2):
    """Deterministic init matching torch.nn.Linear's U(-1/sqrt(fan_in), +)."""
    kw, kb = jax.random.split(key)
    bound = 1.0 / jnp.sqrt(jnp.float32(in_features))
    weight = jax.random.uniform(
        kw, (out_features, in_features), jnp.float32, -bound, bound)
    bias = jax.random.uniform(kb, (out_features,), jnp.float32, -bound, bound)
    return weight, bias


if __name__ == "__main__":
    key = jax.random.PRNGKey(0)
    k_x, k_p, k_u = jax.random.split(key, 3)

    # Same shape as the reference: x1 = torch.randn(1, 2, 2)
    x1 = jax.random.normal(k_x, (1, 2, 2), jnp.float32)
    weight, bias = init_params(k_p)

    out = model_forward(x1, weight, bias, k_u)
    jax.block_until_ready(out)

    assert out.shape == (1, 2, 2) and out.dtype == jnp.float32
    assert bool(jnp.all(jnp.isfinite(out)))
    print("KERNEL_OK")
</pallas_src>

<mosaic_0001>
module attributes {stable_mosaic.version = 11 : i64} {
  func.func @_model_kernel(%arg0: memref<2x2xf32, #tpu.memory_space<vmem>>, %arg1: memref<2x2xf32, #tpu.memory_space<vmem>>, %arg2: memref<1x2xf32, #tpu.memory_space<vmem>>, %arg3: memref<4x2x2xf32, #tpu.memory_space<vmem>>, %arg4: memref<2x2xf32, #tpu.memory_space<vmem>>) attributes {dimension_semantics = [], scalar_prefetch = 0 : i64, scratch_operands = 0 : i64, tpu.core_type = #tpu.core_type<tc>} {
    %c0 = arith.constant 0 : index
    %c0_0 = arith.constant 0 : index
    %0 = vector.load %arg0[%c0, %c0_0] : memref<2x2xf32, #tpu.memory_space<vmem>>, vector<2x2xf32>
    %c0_1 = arith.constant 0 : index
    %c0_2 = arith.constant 0 : index
    %1 = vector.load %arg1[%c0_1, %c0_2] : memref<2x2xf32, #tpu.memory_space<vmem>>, vector<2x2xf32>
    %c0_3 = arith.constant 0 : index
    %c0_4 = arith.constant 0 : index
    %2 = vector.load %arg2[%c0_3, %c0_4] : memref<1x2xf32, #tpu.memory_space<vmem>>, vector<1x2xf32>
    %c0_5 = arith.constant 0 : index
    %c0_6 = arith.constant 0 : index
    %c0_7 = arith.constant 0 : index
    %3 = vector.load %arg3[%c0_5, %c0_6, %c0_7] : memref<4x2x2xf32, #tpu.memory_space<vmem>>, vector<4x2x2xf32>
    %4 = vector.extract_strided_slice %0 {offsets = [0, 0], sizes = [2, 1], strides = [1, 1]} : vector<2x2xf32> to vector<2x1xf32>
    %5 = vector.extract_strided_slice %1 {offsets = [0, 0], sizes = [1, 2], strides = [1, 1]} : vector<2x2xf32> to vector<1x2xf32>
    %6 = vector.broadcast %4 : vector<2x1xf32> to vector<2x2xf32>
    %7 = vector.broadcast %5 : vector<1x2xf32> to vector<2x2xf32>
    %8 = arith.mulf %6, %7 : vector<2x2xf32>
    %9 = vector.extract_strided_slice %0 {offsets = [0, 1], sizes = [2, 1], strides = [1, 1]} : vector<2x2xf32> to vector<2x1xf32>
    %10 = vector.extract_strided_slice %1 {offsets = [1, 0], sizes = [1, 2], strides = [1, 1]} : vector<2x2xf32> to vector<1x2xf32>
    %11 = vector.broadcast %9 : vector<2x1xf32> to vector<2x2xf32>
    %12 = vector.broadcast %10 : vector<1x2xf32> to vector<2x2xf32>
    %13 = arith.mulf %11, %12 : vector<2x2xf32>
    %14 = arith.addf %8, %13 : vector<2x2xf32>
    %15 = vector.broadcast %2 : vector<1x2xf32> to vector<2x2xf32>
    %16 = arith.addf %14, %15 : vector<2x2xf32>
    %17 = vector.extract_strided_slice %3 {offsets = [0, 0, 0], sizes = [1, 2, 2], strides = [1, 1, 1]} : vector<4x2x2xf32> to vector<1x2x2xf32>
    %18 = vector.shape_cast %17 : vector<1x2x2xf32> to vector<2x2xf32>
    %19 = vector.extract_strided_slice %3 {offsets = [1, 0, 0], sizes = [1, 2, 2], strides = [1, 1, 1]} : vector<4x2x2xf32> to vector<1x2x2xf32>
    %20 = vector.shape_cast %19 : vector<1x2x2xf32> to vector<2x2xf32>
    %cst = arith.constant 1.000000e-01 : f32
    %21 = vector.broadcast %cst : f32 to vector<2x2xf32>
    %22 = arith.cmpf oge, %20, %21 : vector<2x2xf32>
    %cst_8 = arith.constant 1.11111116 : f32
    %cst_9 = arith.constant 0.000000e+00 : f32
    %23 = vector.broadcast %cst_8 : f32 to vector<2x2xf32>
    %24 = vector.broadcast %cst_9 : f32 to vector<2x2xf32>
    %25 = arith.select %22, %23, %24 : vector<2x2xi1>, vector<2x2xf32>
    %26 = vector.extract_strided_slice %3 {offsets = [2, 0, 0], sizes = [1, 2, 2], strides = [1, 1, 1]} : vector<4x2x2xf32> to vector<1x2x2xf32>
    %27 = vector.shape_cast %26 : vector<1x2x2xf32> to vector<2x2xf32>
    %cst_10 = arith.constant 2.000000e-01 : f32
    %28 = vector.broadcast %cst_10 : f32 to vector<2x2xf32>
    %29 = arith.cmpf oge, %27, %28 : vector<2x2xf32>
    %cst_11 = arith.constant 1.250000e+00 : f32
    %cst_12 = arith.constant 0.000000e+00 : f32
    %30 = vector.broadcast %cst_11 : f32 to vector<2x2xf32>
    %31 = vector.broadcast %cst_12 : f32 to vector<2x2xf32>
    %32 = arith.select %29, %30, %31 : vector<2x2xi1>, vector<2x2xf32>
    %33 = arith.addf %25, %32 : vector<2x2xf32>
    %34 = vector.extract_strided_slice %3 {offsets = [3, 0, 0], sizes = [1, 2, 2], strides = [1, 1, 1]} : vector<4x2x2xf32> to vector<1x2x2xf32>
    %35 = vector.shape_cast %34 : vector<1x2x2xf32> to vector<2x2xf32>
    %cst_13 = arith.constant 3.000000e-01 : f32
    %36 = vector.broadcast %cst_13 : f32 to vector<2x2xf32>
    %37 = arith.cmpf oge, %35, %36 : vector<2x2xf32>
    %cst_14 = arith.constant 1.42857146 : f32
    %cst_15 = arith.constant 0.000000e+00 : f32
    %38 = vector.broadcast %cst_14 : f32 to vector<2x2xf32>
    %39 = vector.broadcast %cst_15 : f32 to vector<2x2xf32>
    %40 = arith.select %37, %38, %39 : vector<2x2xi1>, vector<2x2xf32>
    %41 = arith.addf %33, %40 : vector<2x2xf32>
    %42 = arith.mulf %16, %41 : vector<2x2xf32>
    %43 = arith.addf %42, %18 : vector<2x2xf32>
    %cst_16 = arith.constant 5.000000e-01 : f32
    %44 = vector.broadcast %cst_16 : f32 to vector<2x2xf32>
    %45 = arith.mulf %44, %43 : vector<2x2xf32>
    %cst_17 = arith.constant 0.707106769 : f32
    %46 = vector.broadcast %cst_17 : f32 to vector<2x2xf32>
    %47 = arith.mulf %43, %46 : vector<2x2xf32>
    %cst_18 = arith.constant 0.000000e+00 : f32
    %48 = vector.broadcast %cst_18 : f32 to vector<2x2xf32>
    %49 = arith.subf %48, %47 : vector<2x2xf32>
    %50 = arith.maximumf %47, %49 : vector<2x2xf32>
    %cst_19 = arith.constant 0.327591091 : f32
    %51 = vector.broadcast %cst_19 : f32 to vector<2x2xf32>
    %52 = arith.mulf %51, %50 : vector<2x2xf32>
    %cst_20 = arith.constant 1.000000e+00 : f32
    %53 = vector.broadcast %cst_20 : f32 to vector<2x2xf32>
    %54 = arith.addf %53, %52 : vector<2x2xf32>
    %cst_21 = arith.constant 1.000000e+00 : f32
    %55 = vector.broadcast %cst_21 : f32 to vector<2x2xf32>
    %56 = arith.divf %55, %54 : vector<2x2xf32>
    %cst_22 = arith.constant 1.06140542 : f32
    %57 = vector.broadcast %cst_22 : f32 to vector<2x2xf32>
    %58 = arith.mulf %57, %56 : vector<2x2xf32>
    %cst_23 = arith.constant -1.45315206 : f32
    %59 = vector.broadcast %cst_23 : f32 to vector<2x2xf32>
    %60 = arith.addf %58, %59 : vector<2x2xf32>
    %61 = arith.mulf %60, %56 : vector<2x2xf32>
    %cst_24 = arith.constant 1.42141378 : f32
    %62 = vector.broadcast %cst_24 : f32 to vector<2x2xf32>
    %63 = arith.addf %61, %62 : vector<2x2xf32>
    %64 = arith.mulf %63, %56 : vector<2x2xf32>
    %cst_25 = arith.constant -0.284496725 : f32
    %65 = vector.broadcast %cst_25 : f32 to vector<2x2xf32>
    %66 = arith.addf %64, %65 : vector<2x2xf32>
    %67 = arith.mulf %66, %56 : vector<2x2xf32>
    %cst_26 = arith.constant 0.254829586 : f32
    %68 = vector.broadcast %cst_26 : f32 to vector<2x2xf32>
    %69 = arith.addf %67, %68 : vector<2x2xf32>
    %70 = arith.mulf %69, %56 : vector<2x2xf32>
    %cst_27 = arith.constant 0.000000e+00 : f32
    %71 = vector.broadcast %cst_27 : f32 to vector<2x2xf32>
    %72 = arith.subf %71, %50 : vector<2x2xf32>
    %73 = arith.mulf %72, %50 : vector<2x2xf32>
    %74 = math.exp %73 : vector<2x2xf32>
    %75 = arith.mulf %70, %74 : vector<2x2xf32>
    %cst_28 = arith.constant 1.000000e+00 : f32
    %76 = vector.broadcast %cst_28 : f32 to vector<2x2xf32>
    %77 = arith.subf %76, %75 : vector<2x2xf32>
    %cst_29 = arith.constant 0.000000e+00 : f32
    %78 = vector.broadcast %cst_29 : f32 to vector<2x2xf32>
    %79 = arith.cmpf olt, %47, %78 : vector<2x2xf32>
    %cst_30 = arith.constant 0.000000e+00 : f32
    %80 = vector.broadcast %cst_30 : f32 to vector<2x2xf32>
    %81 = arith.subf %80, %77 : vector<2x2xf32>
    %82 = arith.select %79, %81, %77 : vector<2x2xi1>, vector<2x2xf32>
    %cst_31 = arith.constant 1.000000e+00 : f32
    %83 = vector.broadcast %cst_31 : f32 to vector<2x2xf32>
    %84 = arith.addf %83, %82 : vector<2x2xf32>
    %85 = arith.mulf %45, %84 : vector<2x2xf32>
    %c0_32 = arith.constant 0 : index
    %c0_33 = arith.constant 0 : index
    %86 = vector.load %arg4[%c0_32, %c0_33] : memref<2x2xf32, #tpu.memory_space<vmem>>, vector<2x2xf32>
    tpu.vector_store %arg4[%c0_32, %c0_33], %85 {strides = array<i32>} : memref<2x2xf32, #tpu.memory_space<vmem>>, vector<2x2xf32>,
    return
  }
}

</mosaic_0001>

<bundles_post_ra>
// kernel: model_forward.1
= control target key start
LH: loop header
LB: loop body
LE: loop exit
PB: predicated region body
PF: predicated region fallthrough
CT: control target
= control target key end

     0   :  { %v141_v1 = vmov 0   ;;  %s203_s0 = inlined_call_operand.vmem [shape: f32[2,2], index: 0, kind: input, shape index: {}]   ;;  %s204_s1 = inlined_call_operand.vmem [shape: f32[2,2], index: 1, kind: input, shape index: {}]   ;;  %s205_s2 = inlined_call_operand.vmem [shape: f32[1,2], index: 2, kind: input, shape index: {}]   ;;  %s206_s3 = inlined_call_operand.vmem [shape: f32[4,2,2], index: 3, kind: input, shape index: {}]   ;;  %s207_s4 = inlined_call_operand.hbm [shape: f32[2,2], index: 4, kind: output, shape index: {}]  }
   0x1   :  { %v18_v0 = vld [vmem:[%s203_s0] sm:$0x3]  ;;  %111 = vset.pattern.permute.xlu0 %v141_v1 }
   0x2   :  { %9 = vsyncpa [#allocation3], 0  ;;  %27 = vperm.xlu0 %111, %v18_v0   ;;  %v142_v2 = vmov 1   ;;  %v30_v3 = vlaneseq  ;;  %v22_v5 = vld [vmem:[%s206_s3 + $0x2] sm:$0x3]  ;;  %v143_v12 = vmov 0.0  }
   0x3   :  { %v23_v6 = vld [vmem:[%s206_s3 + $0x4] sm:$0x3]  ;;  %vm52_vm0 = vcmp.ge.f32.partialorder %v22_v5, 0.1  ;;  %v19_v9 = vld [vmem:[%s204_s1] sm:$0x3] }
   0x4   :  { %v31_v4 = vshrl.u32 %v30_v3, 7  ;;  %vm54_vm1 = vcmp.ge.f32.partialorder %v23_v6, 0.2  ;;  %v24_v10 = vld [vmem:[%s206_s3 + $0x6] sm:$0x3]  ;;  %vm90_vm4 = vcmask 9216  }
   0x5   :  { %v53_v13 = vsel %vm52_vm0, 1.1111112, %v143_v12  ;;  %v55_v14 = vsel %vm54_vm1, 1.25, %v143_v12  ;;  %vm57_vm2 = vcmp.ge.f32.partialorder %v24_v10, 0.3 }
   0x6   :  { %112 = vset.pattern.permute.xlu0 %v142_v2  ;;  %v32_v7 = vsub.s32 0, %v31_v4  ;;  %v41_v8 = vsub.s32 1, %v31_v4  ;;  %v56_v17 = vadd.f32 %v55_v14, %v53_v13  ;;  %v58_v18 = vsel %vm57_vm2, 1.4285715, %v143_v12  ;;  %v106_v22 = vld [vmem:[%s205_s2] ss:$0 sm:$0xff] }
   0x7   :  { %36 = vperm.xlu0 %112, %v18_v0   ;;  %v21_v26 = vld [vmem:[%s206_s3] sm:$0x3]  ;;  %s144_s2 = smov [#allocation2]  }
   0x8   :  { %v33_v15 = vrot.slane %v19_v9, %v32_v7  ;;  %v42_v16 = vrot.slane %v19_v9, %v41_v8  ;;  %v59_v23 = vadd.f32 %v58_v18, %v56_v17  ;;  %s98_s3 = sshll.u32 %s144_s2, 4  ;;  %s99_s3 = int_to_ptr.vmem [resolvable:$true] %s98_s3 }
   0x9   :  { %s117_s27 = scalar_lea.vmem %s99_s3, 32  ;;  %p122_p1 = scmp.lt.s32.totalorder %s99_s3, %s99_s3 }
   0xa   :  { %p118_p0 = scmp.ne.s32.totalorder %s99_s3, %s117_s27  ;;  %p123_p2 = scmp.lt.s32.totalorder %s117_s27, %s117_s27 }
   0xc   :  { %p124_p3 = por %p123_p2, %p122_p1 }
   0xe   :  { %p125_p4 = pnand %p124_p3, %p118_p0 }
  0x81   :  { %v28_v11 = vpop.permute.xlu0 %27 }
  0x82   :  { %v34_v20 = vmul.f32 %v33_v15, %v28_v11 }
  0x86   :  { %v37_v19 = vpop.permute.xlu0 %36 }
  0x87   :  { %v43_v21 = vmul.f32 %v42_v16, %v37_v19 }
  0x89   :  { %v44_v24 = vadd.f32 %v43_v21, %v34_v20 }
  0x8b   :  { %v51_v25 = vadd.f32 %v106_v22, %v44_v24 }
  0x8d   :  { %v60_v27 = vmul.f32 %v59_v23, %v51_v25 }
  0x8f   :  { %v61_v28 = vadd.f32 %v60_v27, %v21_v26 }
  0x91   :  { %v63_v29 = vmul.f32 0.70710677, %v61_v28  ;;  %v62_v52 = vmul.f32 0.5, %v61_v28 }
  0x93   :  { %v64_v30 = vsub.f32 0.0, %v63_v29  ;;  %vm85_vm3 = vcmp.lt.f32.partialorder %v63_v29, 0.0 }
  0x95   :  { %v65_v31 = vmax.f32 %v63_v29, %v64_v30 }
  0x97   :  { %v66_v32 = vmul.f32 0.3275911, %v65_v31  ;;  %v79_v34 = vsub.f32 0.0, %v65_v31 }
  0x99   :  { %v67_v33 = vadd.f32 1.0, %v66_v32  ;;  %v80_v36 = vmul.f32 %v79_v34, %v65_v31 }
  0x9b   :  { %113 = vrcp.f32 %v67_v33  ;;  %v81_v39 = vmul.f32 1.442695, %v80_v36 }
  0x9d   :  { %115 = vpow2.f32 %v81_v39 }
  0xa5   :  { %v114_v35 = vpop.eup %113 }
  0xa6   :  { %v70_v37 = vmul.f32 1.0614054, %v114_v35 }
  0xa7   :  { %v116_v47 = vpop.eup %115 }
  0xa8   :  { %v71_v38 = vadd.f32 -1.4531521, %v70_v37 }
  0xaa   :  { %v72_v40 = vmul.f32 %v114_v35, %v71_v38 }
  0xac   :  { %v73_v41 = vadd.f32 1.4214138, %v72_v40 }
  0xae   :  { %v74_v42 = vmul.f32 %v114_v35, %v73_v41 }
  0xb0   :  { %v75_v43 = vadd.f32 -0.28449672, %v74_v42 }
  0xb2   :  { %v76_v44 = vmul.f32 %v114_v35, %v75_v43 }
  0xb4   :  { %v77_v45 = vadd.f32 0.2548296, %v76_v44 }
  0xb6   :  { %v78_v46 = vmul.f32 %v114_v35, %v77_v45 }
  0xb8   :  { %v83_v48 = vmul.f32 %v116_v47, %v78_v46 }
  0xba   :  { %v84_v49 = vsub.f32 1.0, %v83_v48 }
  0xbc   :  { %v86_v50 = vsub.f32 0.0, %v84_v49 }
  0xbe   :  { %v87_v51 = vsel %vm85_vm3, %v86_v50, %v84_v49 }
  0xbf   :  { %v88_v53 = vadd.f32 1.0, %v87_v51 }
  0xc1   :  { %v89_v54 = vmul.f32 %v88_v53, %v62_v52 }
  0xc3   :  { %91 = vst.msk [vmem:[#allocation2] sm:$0x3] %vm90_vm4, %v89_v54 }
  0xc4   :  { %128 = shalt.err (!%p125_p4)
}
  0xc5   :  { %s129_s30 = scalar_lea.hbm %s207_s4, 32 }
  0xc6   :  { %p130_p5 = scmp.ne.s32.totalorder %s207_s4, %s129_s30  ;;  %p133_p6 = scmp.lt.u32.totalorder %s129_s30, %s207_s4 }
  0xc8   :  { %p135_p7 = pnand %p133_p6, %p130_p5 }
  0xca   :  { %138 = shalt.err (!%p135_p7)
}
  0xcb   :  { %101 = dma.vmem_to_hbm [thread:$0]  %s99_s3, 32, %s207_s4, [#allocation3]  }
  0xcc   :  { %139 = dma.done.wait [#allocation3], 32  }
  0xcd   :  { %140 = vsyncadd [#allocation3], 4294967264 }
  0xce   :  { %105 = vsyncpa [#allocation3], 1 }

</bundles_post_ra>
